<compile_context>
chip_gen: v7x
topology: tpu7x:2x2x1
jax: 0.10.0
libtpu: 0.0.40
codegen_flags: <defaults>
</compile_context>

<pallas_src>
import functools

import jax
import jax.numpy as jnp
from jax.experimental import pallas as pl
from jax.experimental.pallas import tpu as pltpu

N_FEATURES = 10        # rice dataset: iloc[:, :-1] -> 10 feature columns
HIDDEN_NEURONS = 10
LN_EPS = 1e-5          # nn.LayerNorm default eps

# Default per-grid-step batch width (lanes).  Large enough that the ~0.35 us
# fixed per-step cost is amortized against ~0.5-1.25 MB of DMA per step; small
# enough that double-buffered x/out blocks plus the f32 body temporaries stay
# well inside the 32 MiB scoped-VMEM limit requested below (v5e scoped default
# is only 16 MiB; v7x physical VMEM is 64 MiB).
TB_MAX_DEFAULT = 32 * 1024


def _round_up(n, m):
    return ((n + m - 1) // m) * m


def _mlp_kernel(x_ref, w1_ref, p_ref, b2_ref, o_ref):
    # x tile: (F, TB), batch on lanes.  Upcast once if it was shipped as bf16;
    # all post-load math is f32.
    x = x_ref[...].astype(jnp.float32)

    b1 = p_ref[:, 0:1]         # (H, 1) columns of the packed parameter block
    gamma = p_ref[:, 1:2]
    beta = p_ref[:, 2:3]
    w2 = p_ref[:, 3:4]

    # Linear 1 on the MXU: (H, F) @ (F, TB) + (H, 1).
    # NOTE: do not pad F/H up to 128 "for the MXU" - the kernel is HBM-bound
    # and M=K=10 underutilization is irrelevant; padding would only add
    # HBM traffic and VPU work.
    h = jnp.dot(w1_ref[...], x, preferred_element_type=jnp.float32) + b1

    # LayerNorm over the hidden dim (sublane axis), biased variance like torch.
    mean = jnp.mean(h, axis=0, keepdims=True)          # (1, TB)
    centered = h - mean
    var = jnp.mean(centered * centered, axis=0, keepdims=True)
    h = centered * jax.lax.rsqrt(var + LN_EPS) * gamma + beta

    # ReLU
    h = jnp.maximum(h, 0.0)

    # Linear 2: K=10, N=1 -> VPU multiply + sublane reduce (MXU wasted here).
    logits = jnp.sum(h * w2, axis=0, keepdims=True) + b2_ref[0, 0]   # (1, TB)

    # Sigmoid (exp lands on the EUP slot).
    o_ref[...] = 1.0 / (1.0 + jnp.exp(-logits))


def mlp_forward(x, w1, b1, gamma, beta, w2, b2, *,
                tb_max=TB_MAX_DEFAULT, compute_dtype=jnp.float32):
    """x: (B, F) f32.  Returns (B, 1) f32 sigmoid probabilities.

    tb_max:        upper bound on the batch-tile width (lanes per grid step),
                   multiple of 128.
    compute_dtype: dtype x is shipped to the kernel in.  jnp.bfloat16 halves
                   the dominant HBM read; LayerNorm math stays f32 in-kernel.
    """
    B, F = x.shape
    H = w1.shape[0]

    # --- tile / grid selection --------------------------------------------
    Bp = _round_up(B, 128)
    if Bp <= tb_max:
        # Small batch: one grid step minimizes the fixed ~0.35 us/step cost.
        # (On v7x this leaves the second TC idle - acceptable at this size.)
        num_tiles = 1
        tb = Bp
    else:
        # Large batch: >=2 tiles so dimension_semantics=("parallel",) can
        # shard the batch across both TensorCores on v7x.
        num_tiles = pl.cdiv(Bp, tb_max)
        tb = _round_up(pl.cdiv(Bp, num_tiles), 128)
    Bp = tb * num_tiles

    # --- wrapper-side relayout (kept to ONE fused pass over x) -------------
    # Pad rows first, then transpose(+cast): XLA fuses the pad (and bf16 cast)
    # into the single relayout copy instead of making a second full pass.
    if Bp != B:
        x = jnp.pad(x, ((0, Bp - B), (0, 0)))
    xT = jnp.transpose(x).astype(compute_dtype)                  # (F, Bp)

    # Pack the tiny per-hidden-unit params into one VMEM-resident block and
    # the scalar output bias into SMEM.
    packed = jnp.concatenate([b1, gamma, beta, w2], axis=1)      # (H, 4) f32
    b2s = jnp.asarray(b2, jnp.float32).reshape(1, 1)             # (1, 1) f32

    x_bytes = Bp * F * jnp.dtype(compute_dtype).itemsize
    cost = pl.CostEstimate(
        flops=2 * Bp * H * F + 10 * Bp * H + 2 * Bp * H,
        transcendentals=2 * Bp,                                  # rsqrt + exp
        bytes_accessed=x_bytes + Bp * 4 + (H * F + H * 4 + 1) * 4,
    )

    const = lambda shape: pl.BlockSpec(shape, lambda i: (0,) * len(shape))

    out = pl.pallas_call(
        _mlp_kernel,
        out_shape=jax.ShapeDtypeStruct((1, Bp), jnp.float32),
        grid=(num_tiles,),
        in_specs=[
            pl.BlockSpec((F, tb), lambda i: (0, i)),             # x tile (pipelined)
            const((H, F)),                                       # W1 (VMEM-resident)
            const((H, 4)),                                       # b1|gamma|beta|w2
            pl.BlockSpec(memory_space=pltpu.MemorySpace.SMEM),   # b2 scalar
        ],
        out_specs=pl.BlockSpec((1, tb), lambda i: (0, i)),       # lane-dense row
        compiler_params=pltpu.CompilerParams(
            dimension_semantics=("parallel",),                   # 2-TC sharding on v7x
            vmem_limit_bytes=32 * 1024 * 1024,                   # v5e default is 16 MiB
        ),
        cost_estimate=cost,
    )(xT, w1, packed, b2s)

    return out[0, :B].reshape(B, 1)


def init_params(key):
    """Deterministic parameter init (shapes match the PyTorch module)."""
    k1, k2, k3, k4 = jax.random.split(key, 4)
    bound1 = 1.0 / jnp.sqrt(N_FEATURES)
    w1 = jax.random.uniform(k1, (HIDDEN_NEURONS, N_FEATURES), jnp.float32,
                            -bound1, bound1)
    b1 = jax.random.uniform(k2, (HIDDEN_NEURONS, 1), jnp.float32, -bound1, bound1)
    gamma = jnp.ones((HIDDEN_NEURONS, 1), jnp.float32)
    beta = jnp.zeros((HIDDEN_NEURONS, 1), jnp.float32)
    bound2 = 1.0 / jnp.sqrt(HIDDEN_NEURONS)
    w2 = jax.random.uniform(k3, (HIDDEN_NEURONS, 1), jnp.float32, -bound2, bound2)
    b2 = jax.random.uniform(k4, (1, 1), jnp.float32, -bound2, bound2)
    return w1, b1, gamma, beta, w2, b2


def reference_forward(x, w1, b1, gamma, beta, w2, b2):
    h = x @ w1.T + b1[:, 0]                                      # (B, H)
    mean = jnp.mean(h, axis=-1, keepdims=True)
    var = jnp.mean((h - mean) ** 2, axis=-1, keepdims=True)
    h = (h - mean) / jnp.sqrt(var + LN_EPS) * gamma[:, 0] + beta[:, 0]
    h = jnp.maximum(h, 0.0)
    return jax.nn.sigmoid(h @ w2 + b2[0, 0])                     # (B, 1)


if __name__ == "__main__":
    key = jax.random.PRNGKey(0)
    kx, kp = jax.random.split(key)

    batch = 1000                                  # not a multiple of 128 on purpose
    x = jax.random.normal(kx, (batch, N_FEATURES), jnp.float32)
    params = init_params(kp)
    ref = reference_forward(x, *params)

    # 1) default config: single tile, f32
    fwd_f32 = jax.jit(functools.partial(mlp_forward))
    out = fwd_f32(x, *params)
    jax.block_until_ready(out)
    assert out.shape == (batch, 1), out.shape
    assert jnp.allclose(out, ref, atol=1e-5, rtol=1e-5)

    # 2) small tiles -> multi-step pipelined grid (exercises the tiled path)
    fwd_tiled = jax.jit(functools.partial(mlp_forward, tb_max=256))
    out_t = fwd_tiled(x, *params)
    jax.block_until_ready(out_t)
    assert jnp.allclose(out_t, ref, atol=1e-5, rtol=1e-5)

    # 3) bf16 x transfer (halves HBM read); LayerNorm math stays f32 in-kernel
    fwd_bf16 = jax.jit(functools.partial(mlp_forward, compute_dtype=jnp.bfloat16))
    out_b = fwd_bf16(x, *params)
    jax.block_until_ready(out_b)
    assert jnp.allclose(out_b, ref, atol=2e-2, rtol=0.0)

    print("KERNEL_OK")
</pallas_src>

<mosaic_0001>
module attributes {stable_mosaic.version = 11 : i64} {
  func.func @_mlp_kernel(%arg0: i32, %arg1: memref<10x1024xf32, #tpu.memory_space<vmem>>, %arg2: memref<10x10xf32, #tpu.memory_space<vmem>>, %arg3: memref<10x4xf32, #tpu.memory_space<vmem>>, %arg4: memref<1x1xf32, #tpu.memory_space<smem>>, %arg5: memref<1x1024xf32, #tpu.memory_space<vmem>>) attributes {dimension_semantics = [#tpu.dimension_semantics<parallel>], iteration_bounds = array<i64: 1>, scalar_prefetch = 0 : i64, scratch_operands = 0 : i64, tpu.core_type = #tpu.core_type<tc>, window_params = [{transform_indices = @transform_0, window_bounds = array<i64: 10, 1024>}, {pipeline_mode = #tpu.pipeline_mode<synchronous>, transform_indices = @transform_1, window_bounds = array<i64: 10, 10>}, {pipeline_mode = #tpu.pipeline_mode<synchronous>, transform_indices = @transform_2, window_bounds = array<i64: 10, 4>}, {transform_indices = @transform_3, window_bounds = array<i64: 1, 1>}, {transform_indices = @transform_4, window_bounds = array<i64: 1, 1024>}]} {
    %c0 = arith.constant 0 : index
    %c0_0 = arith.constant 0 : index
    %0 = vector.load %arg1[%c0, %c0_0] : memref<10x1024xf32, #tpu.memory_space<vmem>>, vector<10x1024xf32>
    %c0_1 = arith.constant 0 : index
    %c0_2 = arith.constant 0 : index
    %1 = vector.load %arg3[%c0_1, %c0_2] : memref<10x4xf32, #tpu.memory_space<vmem>>, vector<10x1xf32>
    %c0_3 = arith.constant 0 : index
    %c1 = arith.constant 1 : index
    %2 = vector.load %arg3[%c0_3, %c1] : memref<10x4xf32, #tpu.memory_space<vmem>>, vector<10x1xf32>
    %c0_4 = arith.constant 0 : index
    %c2 = arith.constant 2 : index
    %3 = vector.load %arg3[%c0_4, %c2] : memref<10x4xf32, #tpu.memory_space<vmem>>, vector<10x1xf32>
    %c0_5 = arith.constant 0 : index
    %c3 = arith.constant 3 : index
    %4 = vector.load %arg3[%c0_5, %c3] : memref<10x4xf32, #tpu.memory_space<vmem>>, vector<10x1xf32>
    %c0_6 = arith.constant 0 : index
    %c0_7 = arith.constant 0 : index
    %5 = vector.load %arg2[%c0_6, %c0_7] : memref<10x10xf32, #tpu.memory_space<vmem>>, vector<10x10xf32>
    %cst = arith.constant dense<0.000000e+00> : vector<10x1024xf32>
    %6 = tpu.matmul %5, %0, %cst {dimension_numbers = #tpu.dot_dimension_numbers<[1], [0], [0], [1], [0, 0, 1, 1], [], []>} : vector<10x10xf32>, vector<10x1024xf32>, vector<10x1024xf32> -> vector<10x1024xf32>
    %7 = vector.broadcast %1 : vector<10x1xf32> to vector<10x1024xf32>
    %8 = arith.addf %6, %7 : vector<10x1024xf32>
    %cst_8 = arith.constant dense<0.000000e+00> : vector<1024xf32>
    %9 = vector.multi_reduction <add>, %8, %cst_8 [0] : vector<10x1024xf32> to vector<1024xf32>
    %10 = vector.shape_cast %9 : vector<1024xf32> to vector<1x1024xf32>
    %cst_9 = arith.constant 1.000000e+01 : f32
    %11 = vector.broadcast %cst_9 : f32 to vector<1x1024xf32>
    %12 = arith.divf %10, %11 : vector<1x1024xf32>
    %13 = vector.broadcast %12 : vector<1x1024xf32> to vector<10x1024xf32>
    %14 = arith.subf %8, %13 : vector<10x1024xf32>
    %15 = arith.mulf %14, %14 : vector<10x1024xf32>
    %cst_10 = arith.constant dense<0.000000e+00> : vector<1024xf32>
    %16 = vector.multi_reduction <add>, %15, %cst_10 [0] : vector<10x1024xf32> to vector<1024xf32>
    %17 = vector.shape_cast %16 : vector<1024xf32> to vector<1x1024xf32>
    %cst_11 = arith.constant 1.000000e+01 : f32
    %18 = vector.broadcast %cst_11 : f32 to vector<1x1024xf32>
    %19 = arith.divf %17, %18 : vector<1x1024xf32>
    %cst_12 = arith.constant 9.99999974E-6 : f32
    %20 = vector.broadcast %cst_12 : f32 to vector<1x1024xf32>
    %21 = arith.addf %19, %20 : vector<1x1024xf32>
    %22 = math.rsqrt %21 : vector<1x1024xf32>
    %23 = vector.broadcast %22 : vector<1x1024xf32> to vector<10x1024xf32>
    %24 = arith.mulf %14, %23 : vector<10x1024xf32>
    %25 = vector.broadcast %2 : vector<10x1xf32> to vector<10x1024xf32>
    %26 = arith.mulf %24, %25 : vector<10x1024xf32>
    %27 = vector.broadcast %3 : vector<10x1xf32> to vector<10x1024xf32>
    %28 = arith.addf %26, %27 : vector<10x1024xf32>
    %cst_13 = arith.constant 0.000000e+00 : f32
    %29 = vector.broadcast %cst_13 : f32 to vector<10x1024xf32>
    %30 = arith.maximumf %28, %29 : vector<10x1024xf32>
    %31 = vector.broadcast %4 : vector<10x1xf32> to vector<10x1024xf32>
    %32 = arith.mulf %30, %31 : vector<10x1024xf32>
    %cst_14 = arith.constant dense<0.000000e+00> : vector<1024xf32>
    %33 = vector.multi_reduction <add>, %32, %cst_14 [0] : vector<10x1024xf32> to vector<1024xf32>
    %34 = vector.shape_cast %33 : vector<1024xf32> to vector<1x1024xf32>
    %c0_15 = arith.constant 0 : index
    %c0_16 = arith.constant 0 : index
    %35 = memref.load %arg4[%c0_15, %c0_16] : memref<1x1xf32, #tpu.memory_space<smem>>
    %36 = vector.broadcast %35 : f32 to vector<1x1024xf32>
    %37 = arith.addf %34, %36 : vector<1x1024xf32>
    %cst_17 = arith.constant 0.000000e+00 : f32
    %38 = vector.broadcast %cst_17 : f32 to vector<1x1024xf32>
    %39 = arith.subf %38, %37 : vector<1x1024xf32>
    %40 = math.exp %39 : vector<1x1024xf32>
    %cst_18 = arith.constant 1.000000e+00 : f32
    %41 = vector.broadcast %cst_18 : f32 to vector<1x1024xf32>
    %42 = arith.addf %41, %40 : vector<1x1024xf32>
    %cst_19 = arith.constant 1.000000e+00 : f32
    %43 = vector.broadcast %cst_19 : f32 to vector<1x1024xf32>
    %44 = arith.divf %43, %42 : vector<1x1024xf32>
    %c0_20 = arith.constant 0 : index
    %c0_21 = arith.constant 0 : index
    %45 = vector.load %arg5[%c0_20, %c0_21] : memref<1x1024xf32, #tpu.memory_space<vmem>>, vector<1x1024xf32>
    tpu.vector_store %arg5[%c0_20, %c0_21], %44 {strides = array<i32>} : memref<1x1024xf32, #tpu.memory_space<vmem>>, vector<1x1024xf32>,
    return
  }
  func.func @transform_0(%arg0: i32) -> (i32, i32) {
    %c0_i32 = arith.constant 0 : i32
    %c0_i32_0 = arith.constant 0 : i32
    return %c0_i32, %arg0 : i32, i32
  }
  func.func @transform_1(%arg0: i32) -> (i32, i32) {
    %c0_i32 = arith.constant 0 : i32
    %c0_i32_0 = arith.constant 0 : i32
    %c0_i32_1 = arith.constant 0 : i32
    return %c0_i32, %c0_i32_0 : i32, i32
  }
  func.func @transform_2(%arg0: i32) -> (i32, i32) {
    %c0_i32 = arith.constant 0 : i32
    %c0_i32_0 = arith.constant 0 : i32
    %c0_i32_1 = arith.constant 0 : i32
    return %c0_i32, %c0_i32_0 : i32, i32
  }
  func.func @transform_3(%arg0: i32) -> (i32, i32) {
    %c0_i32 = arith.constant 0 : i32
    %c0_i32_0 = arith.constant 0 : i32
    %c0_i32_1 = arith.constant 0 : i32
    return %c0_i32, %c0_i32_0 : i32, i32
  }
  func.func @transform_4(%arg0: i32) -> (i32, i32) {
    %c0_i32 = arith.constant 0 : i32
    %c0_i32_0 = arith.constant 0 : i32
    return %c0_i32, %arg0 : i32, i32
  }
}

</mosaic_0001>

<bundles_post_ra>
// kernel: mlp_forward.1
= control target key start
LH: loop header
LB: loop body
LE: loop exit
PB: predicated region body
PF: predicated region fallthrough
CT: control target
= control target key end

     0   :  { %vm55_vm0 = vcmask 1041408   ;;  %vm971_vm1 = vmmov 1   ;;  %v972_v3 = vmov 0.0   ;;  %v973_v8 = vmov 0   ;;  %s1336_s0 = inlined_call_operand.vmem [shape: f32[10,1024], index: 0, kind: input, shape index: {}]   ;;  %s1337_s1 = inlined_call_operand.vmem [shape: f32[10,10], index: 1, kind: input, shape index: {}]   ;;  %s1338_s2 = inlined_call_operand.vmem [shape: f32[10,4], index: 2, kind: input, shape index: {}]   ;;  %s1339_s3 = inlined_call_operand.<no memory space> [shape: f32[1,1], index: 3, kind: input, shape index: {}]   ;;  %s1340_s4 = inlined_call_operand.vmem [shape: f32[1,1024], index: 4, kind: output, shape index: {}]  }
   0x1   :  { %v19_v0 = vld [vmem:[%s1336_s0 + $0x8] sm:$0xff]  ;;  %vm1010_vm2 = vmpackc.low %vm55_vm0, %vm971_vm1  ;;  %144 = vmatprep.mubr.f32.mxu0 %v972_v3  ;;  %221 = vmatprep.mubr.f32.mxu1 %v972_v3  ;;  %v21_v5 = vld [vmem:[%s1336_s0 + $0x18] sm:$0xff]  ;;  %v974_v9 = vmov 1   ;;  %vm48_vm3 = vcmask 80896   ;;  %v975_v32 = vmov 2   ;;  %v976_v33 = vmov 3  }
   0x2   :  { %v27_v1 = vld [vmem:[%s1336_s0 + $0x48] sm:$0x3]  ;;  %v29_v6 = vld [vmem:[%s1336_s0 + $0x58] sm:$0x3]  ;;  %v18_v7 = vld [vmem:[%s1336_s0] sm:$0xff]  ;;  %917 = vset.pattern.permute.xlu0 %v973_v8  ;;  %918 = vset.pattern.permute.xlu1 %v974_v9 }
   0x3   :  { %v886_v4 = vpack.c.bf16 %v27_v1, %v19_v0  ;;  %v892_v10 = vpack.c.bf16 %v29_v6, %v21_v5  ;;  %v26_v11 = vld [vmem:[%s1336_s0 + $0x40] sm:$0x3]  ;;  %v20_v12 = vld [vmem:[%s1336_s0 + $0x10] sm:$0xff]  ;;  %v23_v17 = vld [vmem:[%s1336_s0 + $0x28] sm:$0xff] }
   0x4   :  { %v28_v13 = vld [vmem:[%s1336_s0 + $0x50] sm:$0x3]  ;;  %v889_v14 = vpack.c.bf16 %v26_v11, %v18_v7  ;;  %v36_v16 = vld [vmem:[%s1337_s1] sm:$0xff]  ;;  %v31_v18 = vld [vmem:[%s1336_s0 + $0x68] sm:$0x3] }
   0x5   :  { %888 = vmatprep.subr.msk.bf16.mxu0 %vm1010_vm2, %v886_v4  ;;  %v895_v15 = vpack.c.bf16 %v28_v13, %v20_v12  ;;  %894 = vmatprep.subr.msk.bf16.mxu1 %vm1010_vm2, %v892_v10  ;;  %v898_v19 = vpack.c.bf16 %v31_v18, %v23_v17  ;;  %v25_v20 = vld [vmem:[%s1336_s0 + $0x38] sm:$0xff]  ;;  %v22_v22 = vld [vmem:[%s1336_s0 + $0x20] sm:$0xff]  ;;  %v24_v25 = vld [vmem:[%s1336_s0 + $0x30] sm:$0xff] }
   0x6   :  { %v33_v21 = vld [vmem:[%s1336_s0 + $0x78] sm:$0x3]  ;;  %891 = vmatpush1.bf16.msk.msra.mxu0 %vm1010_vm2, %v889_v14  ;;  %v30_v24 = vld [vmem:[%s1336_s0 + $0x60] sm:$0x3]  ;;  %v32_v26 = vld [vmem:[%s1336_s0 + $0x70] sm:$0x3] }
   0x7   :  { %897 = vmatpush1.bf16.msk.msra.mxu1 %vm1010_vm2, %v895_v15  ;;  %v904_v23 = vpack.c.bf16 %v33_v21, %v25_v20  ;;  %900 = vmatprep.subr.msk.bf16.mxu0 %vm1010_vm2, %v898_v19  ;;  %v901_v27 = vpack.c.bf16 %v30_v24, %v22_v22  ;;  %v907_v28 = vpack.c.bf16 %v32_v26, %v24_v25  ;;  %v35_v29 = vld [vmem:[%s1338_s2 + $0x8] sm:$0x3]  ;;  %v34_v30 = vld [vmem:[%s1338_s2] sm:$0xff] }
   0x8   :  { %45 = vperm.xlu0 %917, %v35_v29   ;;  %v37_v31 = vld [vmem:[%s1337_s1 + $0x8] sm:$0x3]  ;;  %602 = vperm.xlu1 %918, %v35_v29  }
   0x9   :  { %906 = vmatprep.subr.msk.bf16.mxu1 %vm1010_vm2, %v904_v23  ;;  %872 = vmatmul.mubr.msk.f32.vlgmr.msra.gmra.mrb[0].mxu0 %vm48_vm3, %v36_v16 }
   0xa   :  { %876 = vmatmul.mubr.msk.f32.vlgmr.msra.gmra.mrb[0].mxu1 %vm48_vm3, %v36_v16  ;;  %903 = vmatpush1.bf16.msk.msra.mxu0 %vm1010_vm2, %v901_v27 }
   0xb   :  { %909 = vmatpush1.bf16.msk.msra.mxu1 %vm1010_vm2, %v907_v28  ;;  %150 = vmatprep.mubr.f32.mxu0 %v972_v3 }
   0xc   :  { %227 = vmatprep.mubr.f32.mxu1 %v972_v3  ;;  %40 = vperm.xlu0 %917, %v34_v30  }
   0xd   :  { %873 = vmatmul.mubr.msk.f32.gmra.mrb[2].mxu0 %vm48_vm3, %v37_v31  ;;  %598 = vperm.xlu1 %918, %v34_v30  }
   0xe   :  { %877 = vmatmul.mubr.msk.f32.gmra.mrb[2].mxu1 %vm48_vm3, %v37_v31  ;;  %298 = vmatprep.mubr.f32.mxu0 %v972_v3 }
   0xf   :  { %375 = vmatprep.mubr.f32.mxu1 %v972_v3 }
  0x10   :  { %919 = vset.pattern.permute.xlu0 %v975_v32 }
  0x11   :  { %880 = vmatmul.mubr.msk.f32.vlgmr.msra.gmra.mrb[4].mxu0 %vm48_vm3, %v36_v16  ;;  %626 = vperm.xlu0 %919, %v35_v29  }
  0x12   :  { %884 = vmatmul.mubr.msk.f32.vlgmr.msra.gmra.mrb[4].mxu1 %vm48_vm3, %v36_v16  ;;  %304 = vmatprep.mubr.f32.mxu0 %v972_v3 }
  0x13   :  { %381 = vmatprep.mubr.f32.mxu1 %v972_v3  ;;  %920 = vset.pattern.permute.xlu1 %v975_v32 }
  0x14   :  { %622 = vperm.xlu1 %920, %v34_v30  }
  0x15   :  { %881 = vmatmul.mubr.msk.f32.gmra.mrb[6].mxu0 %vm48_vm3, %v37_v31  ;;  %922 = vset.pattern.permute.xlu0 %v976_v33 }
  0x16   :  { %885 = vmatmul.mubr.msk.f32.gmra.mrb[6].mxu1 %vm48_vm3, %v37_v31  ;;  %662 = vperm.xlu0 %922, %v34_v30  }
  0x18   :  { %921 = vset.pattern.permute.xlu1 %v976_v33 }
  0x19   :  { %666 = vperm.xlu1 %921, %v35_v29  }
  0x87   :  { %v46_v34 = vpop.permute.xlu0 %45 }
  0x8b   :  { %v41_v39 = vpop.permute.xlu0 %40 }
  0xdc   :  { %v146_v35 = vpop.f32.mrb[0].mxu0 }
  0xdd   :  { %v223_v36 = vpop.f32.mrb[0].mxu1  ;;  %v148_v37 = vpop.f32.mrb[1].mxu0  ;;  %v1096_v46 = vadd.f32 %v146_v35, %v41_v39 }
  0xde   :  { %v225_v38 = vpop.f32.mrb[1].mxu1  ;;  %v1098_v47 = vadd.f32 %v223_v36, %v41_v39  ;;  %v1104_v50 = vadd.f32 %v148_v37, %v41_v39 }
  0xdf   :  { %v1106_v51 = vadd.f32 %v225_v38, %v41_v39 }
  0xe0   :  { %v152_v40 = vpop.f32.mrb[2].mxu0 }
  0xe1   :  { %v229_v41 = vpop.f32.mrb[2].mxu1  ;;  %v1092_v42 = vadd.f32 %v152_v40, %v46_v34  ;;  %v154_v44 = vpop.f32.mrb[3].mxu0 }
  0xe2   :  { %v1094_v43 = vadd.f32 %v229_v41, %v46_v34  ;;  %v231_v45 = vpop.f32.mrb[3].mxu1  ;;  %v1100_v48 = vadd.f32 %v154_v44, %v46_v34 }
  0xe3   :  { %v1102_v49 = vadd.f32 %v231_v45, %v46_v34  ;;  %v388_v52 = vsel %vm55_vm0, %v1092_v42, 0.0 }
  0xe4   :  { %v404_v53 = vsel %vm55_vm0, %v1094_v43, 0.0  ;;  %v389_v54 = vadd.f32 %v388_v52, %v1096_v46  ;;  %v396_v56 = vsel %vm55_vm0, %v1100_v48, 0.0  ;;  %v300_v58 = vpop.f32.mrb[4].mxu0 }
  0xe5   :  { %v405_v55 = vadd.f32 %v404_v53, %v1098_v47  ;;  %v412_v57 = vsel %vm55_vm0, %v1102_v49, 0.0  ;;  %v377_v59 = vpop.f32.mrb[4].mxu1  ;;  %v397_v60 = vadd.f32 %v396_v56, %v1104_v50  ;;  %v302_v62 = vpop.f32.mrb[5].mxu0  ;;  %v1120_v4 = vadd.f32 %v300_v58, %v41_v39 }
  0xe6   :  { %v413_v61 = vadd.f32 %v412_v57, %v1106_v51  ;;  %v379_v63 = vpop.f32.mrb[5].mxu1  ;;  %v390_v0 = vrot.slane %v389_v54, 4  ;;  %v1122_v5 = vadd.f32 %v377_v59, %v41_v39  ;;  %v1124_v8 = vadd.f32 %v302_v62, %v41_v39 }
  0xe7   :  { %v406_v1 = vrot.slane %v405_v55, 4  ;;  %v398_v2 = vrot.slane %v397_v60, 4  ;;  %v1126_v9 = vadd.f32 %v379_v63, %v41_v39 }
  0xe8   :  { %v414_v3 = vrot.slane %v413_v61, 4  ;;  %v391_v6 = vadd.f32 %v390_v0, %v389_v54  ;;  %v306_v10 = vpop.f32.mrb[6].mxu0 }
  0xe9   :  { %v407_v7 = vadd.f32 %v406_v1, %v405_v55  ;;  %v383_v11 = vpop.f32.mrb[6].mxu1  ;;  %v399_v12 = vadd.f32 %v398_v2, %v397_v60  ;;  %v1128_v14 = vadd.f32 %v306_v10, %v46_v34  ;;  %v308_v16 = vpop.f32.mrb[7].mxu0 }
  0xea   :  { %v415_v13 = vadd.f32 %v414_v3, %v413_v61  ;;  %v1130_v15 = vadd.f32 %v383_v11, %v46_v34  ;;  %v385_v17 = vpop.f32.mrb[7].mxu1  ;;  %v392_v18 = vrot.slane %v391_v6, 2  ;;  %v1132_v20 = vadd.f32 %v308_v16, %v46_v34 }
  0xeb   :  { %v408_v19 = vrot.slane %v407_v7, 2  ;;  %v1134_v21 = vadd.f32 %v385_v17, %v46_v34  ;;  %v400_v22 = vrot.slane %v399_v12, 2  ;;  %v420_v24 = vsel %vm55_vm0, %v1128_v14, 0.0 }
  0xec   :  { %v416_v23 = vrot.slane %v415_v13, 2  ;;  %v436_v25 = vsel %vm55_vm0, %v1130_v15, 0.0  ;;  %v393_v26 = vadd.f32 %v392_v18, %v391_v6  ;;  %v421_v28 = vadd.f32 %v420_v24, %v1120_v4 }
  0xed   :  { %v409_v27 = vadd.f32 %v408_v19, %v407_v7  ;;  %v437_v29 = vadd.f32 %v436_v25, %v1122_v5  ;;  %v401_v30 = vadd.f32 %v400_v22, %v399_v12  ;;  %v428_v32 = vsel %vm55_vm0, %v1132_v20, 0.0 }
  0xee   :  { %v417_v31 = vadd.f32 %v416_v23, %v415_v13  ;;  %v444_v33 = vsel %vm55_vm0, %v1134_v21, 0.0  ;;  %v394_v34 = vrot.slane %v393_v26, 1  ;;  %v422_v36 = vrot.slane %v421_v28, 4 }
  0xef   :  { %v410_v35 = vrot.slane %v409_v27, 1  ;;  %v438_v37 = vrot.slane %v437_v29, 4  ;;  %v402_v38 = vrot.slane %v401_v30, 1  ;;  %v429_v40 = vadd.f32 %v428_v32, %v1124_v8 }
  0xf0   :  { %v418_v39 = vrot.slane %v417_v31, 1  ;;  %v445_v41 = vadd.f32 %v444_v33, %v1126_v9  ;;  %v395_v44 = vadd.f32 %v394_v34, %v393_v26  ;;  %v423_v52 = vadd.f32 %v422_v36, %v421_v28 }
  0xf1   :  { %v411_v45 = vadd.f32 %v410_v35, %v409_v27  ;;  %v439_v53 = vadd.f32 %v438_v37, %v437_v29  ;;  %v403_v54 = vadd.f32 %v402_v38, %v401_v30  ;;  %v430_v56 = vrot.slane %v429_v40, 4 }
  0xf2   :  { %v419_v55 = vadd.f32 %v418_v39, %v417_v31  ;;  %v446_v57 = vrot.slane %v445_v41, 4  ;;  %v453_v58 = vmul.f32 0.1, %v395_v44  ;;  %v424_v60 = vrot.slane %v423_v52, 2 }
  0xf3   :  { %v455_v59 = vmul.f32 0.1, %v411_v45  ;;  %v440_v61 = vrot.slane %v439_v53, 2  ;;  %v454_v62 = vmul.f32 0.1, %v403_v54  ;;  %v431_v0 = vadd.f32 %v430_v56, %v429_v40 }
  0xf4   :  { %v456_v63 = vmul.f32 0.1, %v419_v55  ;;  %v447_v1 = vadd.f32 %v446_v57, %v445_v41  ;;  %v1149_v2 = vsub.f32 %v1096_v46, %v453_v58  ;;  %v1152_v3 = vsub.f32 %v1092_v42, %v453_v58 }
  0xf5   :  { %v1155_v6 = vsub.f32 %v1098_v47, %v455_v59  ;;  %v1158_v7 = vsub.f32 %v1094_v43, %v455_v59  ;;  %v1161_v10 = vsub.f32 %v1104_v50, %v454_v62  ;;  %v1164_v11 = vsub.f32 %v1100_v48, %v454_v62 }
  0xf6   :  { %v1167_v12 = vsub.f32 %v1106_v51, %v456_v63  ;;  %v1170_v46 = vsub.f32 %v1102_v49, %v456_v63  ;;  %v477_v42 = vmul.f32 %v1149_v2, %v1149_v2  ;;  %v485_v47 = vmul.f32 %v1152_v3, %v1152_v3 }
  0xf7   :  { %v479_v43 = vmul.f32 %v1155_v6, %v1155_v6  ;;  %v487_v50 = vmul.f32 %v1158_v7, %v1158_v7  ;;  %v478_v48 = vmul.f32 %v1161_v10, %v1161_v10  ;;  %v486_v51 = vmul.f32 %v1164_v11, %v1164_v11 }
  0xf8   :  { %v480_v49 = vmul.f32 %v1167_v12, %v1167_v12  ;;  %v488_v13 = vmul.f32 %v1170_v46, %v1170_v46  ;;  %v493_v16 = vsel %vm55_vm0, %v485_v47, 0.0  ;;  %v425_v18 = vadd.f32 %v424_v60, %v423_v52 }
  0xf9   :  { %v509_v17 = vsel %vm55_vm0, %v487_v50, 0.0  ;;  %v441_v19 = vadd.f32 %v440_v61, %v439_v53  ;;  %v494_v22 = vadd.f32 %v493_v16, %v477_v42  ;;  %v501_v24 = vsel %vm55_vm0, %v486_v51, 0.0 }
  0xfa   :  { %v510_v23 = vadd.f32 %v509_v17, %v479_v43  ;;  %v517_v25 = vsel %vm55_vm0, %v488_v13, 0.0  ;;  %v502_v26 = vadd.f32 %v501_v24, %v478_v48  ;;  %v426_v28 = vrot.slane %v425_v18, 1 }
  0xfb   :  { %v518_v27 = vadd.f32 %v517_v25, %v480_v49  ;;  %v442_v29 = vrot.slane %v441_v19, 1  ;;  %v495_v30 = vrot.slane %v494_v22, 4  ;;  %v432_v32 = vrot.slane %v431_v0, 2 }
  0xfc   :  { %v511_v31 = vrot.slane %v510_v23, 4  ;;  %v448_v33 = vrot.slane %v447_v1, 2  ;;  %v503_v34 = vrot.slane %v502_v26, 4  ;;  %v427_v36 = vadd.f32 %v426_v28, %v425_v18 }
  0xfd   :  { %v519_v35 = vrot.slane %v518_v27, 4  ;;  %v443_v37 = vadd.f32 %v442_v29, %v441_v19  ;;  %v496_v38 = vadd.f32 %v495_v30, %v494_v22  ;;  %v433_v40 = vadd.f32 %v432_v32, %v431_v0 }
  0xfe   :  { %v512_v39 = vadd.f32 %v511_v31, %v510_v23  ;;  %v449_v41 = vadd.f32 %v448_v33, %v447_v1  ;;  %v504_v44 = vadd.f32 %v503_v34, %v502_v26  ;;  %v457_v52 = vmul.f32 0.1, %v427_v36 }
  0xff   :  { %v520_v45 = vadd.f32 %v519_v35, %v518_v27  ;;  %v459_v53 = vmul.f32 0.1, %v443_v37  ;;  %v497_v54 = vrot.slane %v496_v38, 2  ;;  %v434_v56 = vrot.slane %v433_v40, 1 }
 0x100   :  { %v513_v55 = vrot.slane %v512_v39, 2  ;;  %v450_v57 = vrot.slane %v449_v41, 1  ;;  %v505_v58 = vrot.slane %v504_v44, 2  ;;  %v1193_v60 = vsub.f32 %v1120_v4, %v457_v52 }
 0x101   :  { %v521_v59 = vrot.slane %v520_v45, 2  ;;  %v1196_v61 = vsub.f32 %v1128_v14, %v457_v52  ;;  %v498_v62 = vadd.f32 %v497_v54, %v496_v38  ;;  %v1199_v0 = vsub.f32 %v1122_v5, %v459_v53 }
 0x102   :  { %v514_v63 = vadd.f32 %v513_v55, %v512_v39  ;;  %v1202_v1 = vsub.f32 %v1130_v15, %v459_v53  ;;  %v506_v42 = vadd.f32 %v505_v58, %v504_v44  ;;  %v481_v43 = vmul.f32 %v1193_v60, %v1193_v60 }
 0x103   :  { %v522_v47 = vadd.f32 %v521_v59, %v520_v45  ;;  %v489_v4 = vmul.f32 %v1196_v61, %v1196_v61  ;;  %v499_v50 = vrot.slane %v498_v62, 1  ;;  %v483_v14 = vmul.f32 %v1199_v0, %v1199_v0 }
 0x104   :  { %v515_v48 = vrot.slane %v514_v63, 1  ;;  %v491_v5 = vmul.f32 %v1202_v1, %v1202_v1  ;;  %v507_v51 = vrot.slane %v506_v42, 1  ;;  %v435_v13 = vadd.f32 %v434_v56, %v433_v40 }
 0x105   :  { %v523_v49 = vrot.slane %v522_v47, 1  ;;  %v525_v15 = vsel %vm55_vm0, %v489_v4, 0.0  ;;  %v500_v16 = vadd.f32 %v499_v50, %v498_v62  ;;  %v451_v29 = vadd.f32 %v450_v57, %v449_v41 }
 0x106   :  { %v516_v17 = vadd.f32 %v515_v48, %v514_v63  ;;  %v526_v18 = vadd.f32 %v525_v15, %v481_v43  ;;  %v541_v19 = vsel %vm55_vm0, %v491_v5, 0.0  ;;  %v508_v22 = vadd.f32 %v507_v51, %v506_v42 }
 0x107   :  { %v524_v23 = vadd.f32 %v523_v49, %v522_v47  ;;  %v542_v24 = vadd.f32 %v541_v19, %v483_v14  ;;  %v458_v25 = vmul.f32 0.1, %v435_v13  ;;  %v557_v26 = vmul.f32 0.1, %v500_v16 }
 0x108   :  { %v559_v27 = vmul.f32 0.1, %v516_v17  ;;  %v527_v28 = vrot.slane %v526_v18, 4  ;;  %v558_v30 = vmul.f32 0.1, %v508_v22  ;;  %v1243_v16 = vstv %s1339_s3 }
 0x109   :  { %v560_v31 = vmul.f32 0.1, %v524_v23  ;;  %v543_v32 = vrot.slane %v542_v24, 4  ;;  %v1215_v33 = vsub.f32 %v1124_v8, %v458_v25  ;;  %v565_v34 = vadd.f32 1e-05, %v557_v26  ;;  %v1224_v8 = vpop.permute.xlu1 %602 }
 0x10a   :  { %v567_v35 = vadd.f32 1e-05, %v559_v27  ;;  %v528_v36 = vadd.f32 %v527_v28, %v526_v18  ;;  %v1218_v37 = vsub.f32 %v1132_v20, %v458_v25  ;;  %v566_v38 = vadd.f32 1e-05, %v558_v30 }
 0x10b   :  { %v568_v39 = vadd.f32 1e-05, %v560_v31  ;;  %v544_v40 = vadd.f32 %v543_v32, %v542_v24  ;;  %v482_v44 = vmul.f32 %v1215_v33, %v1215_v33  ;;  %923 = vrsqrt.f32 %v565_v34 }
 0x10c   :  { %v529_v41 = vrot.slane %v528_v36, 2  ;;  %v490_v45 = vmul.f32 %v1218_v37, %v1218_v37  ;;  %v460_v52 = vmul.f32 0.1, %v451_v29  ;;  %925 = vrsqrt.f32 %v567_v35  ;;  %v1256_v35 = vpop.permute.xlu0 %626 }
 0x10d   :  { %v545_v53 = vrot.slane %v544_v40, 2  ;;  %927 = vrsqrt.f32 %v566_v38  ;;  %v1237_v4 = vpop.permute.xlu1 %598 }
 0x10e   :  { %v530_v54 = vadd.f32 %v529_v41, %v528_v36  ;;  %v533_v20 = vsel %vm55_vm0, %v490_v45, 0.0  ;;  %v1228_v55 = vsub.f32 %v1126_v9, %v460_v52  ;;  %929 = vrsqrt.f32 %v568_v39 }
 0x10f   :  { %v546_v56 = vadd.f32 %v545_v53, %v544_v40  ;;  %v534_v57 = vadd.f32 %v533_v20, %v482_v44  ;;  %v1231_v58 = vsub.f32 %v1134_v21, %v460_v52 }
 0x110   :  { %v531_v59 = vrot.slane %v530_v54, 1  ;;  %v484_v62 = vmul.f32 %v1228_v55, %v1228_v55 }
 0x111   :  { %v547_v63 = vrot.slane %v546_v56, 1  ;;  %v535_v42 = vrot.slane %v534_v57, 4  ;;  %v492_v47 = vmul.f32 %v1231_v58, %v1231_v58  ;;  %v1249_v28 = vpop.permute.xlu1 %622 }
 0x112   :  { %v532_v43 = vadd.f32 %v531_v59, %v530_v54 }
 0x113   :  { %v548_v9 = vadd.f32 %v547_v63, %v546_v56  ;;  %v536_v50 = vadd.f32 %v535_v42, %v534_v57  ;;  %v549_v48 = vsel %vm55_vm0, %v492_v47, 0.0 }
 0x114   :  { %v561_v14 = vmul.f32 0.1, %v532_v43  ;;  %v550_v5 = vadd.f32 %v549_v48, %v484_v62 }
 0x115   :  { %v563_v21 = vmul.f32 0.1, %v548_v9  ;;  %v537_v51 = vrot.slane %v536_v50, 2  ;;  %v924_v49 = vpop.eup %923  ;;  %v1267_v53 = vpop.permute.xlu1 %666 }
 0x116   :  { %v569_v15 = vadd.f32 1e-05, %v561_v14  ;;  %v551_v13 = vrot.slane %v550_v5, 4  ;;  %v926_v17 = vpop.eup %925  ;;  %v581_v18 = vmul.f32 %v924_v49, %v1149_v2  ;;  %v589_v19 = vmul.f32 %v924_v49, %v1152_v3 }
 0x117   :  { %v571_v22 = vadd.f32 1e-05, %v563_v21  ;;  %v538_v23 = vadd.f32 %v537_v51, %v536_v50  ;;  %v928_v24 = vpop.eup %927  ;;  %v583_v25 = vmul.f32 %v926_v17, %v1155_v6  ;;  %v591_v26 = vmul.f32 %v926_v17, %v1158_v7 }
 0x118   :  { %931 = vrsqrt.f32 %v569_v15  ;;  %v552_v27 = vadd.f32 %v551_v13, %v550_v5  ;;  %v930_v29 = vpop.eup %929  ;;  %v582_v30 = vmul.f32 %v928_v24, %v1161_v10  ;;  %v590_v31 = vmul.f32 %v928_v24, %v1164_v11 }
 0x119   :  { %933 = vrsqrt.f32 %v571_v22  ;;  %v539_v2 = vrot.slane %v538_v23, 1  ;;  %v584_v3 = vmul.f32 %v930_v29, %v1167_v12  ;;  %v592_v32 = vmul.f32 %v930_v29, %v1170_v46 }
 0x11a   :  { %v553_v34 = vrot.slane %v552_v27, 2  ;;  %v613_v6 = vmul.f32 %v1224_v8, %v589_v19  ;;  %v614_v36 = vmul.f32 %v1224_v8, %v590_v31  ;;  %v615_v38 = vmul.f32 %v1224_v8, %v591_v26 }
 0x11b   :  { %v540_v7 = vadd.f32 %v539_v2, %v538_v23  ;;  %v605_v10 = vmul.f32 %v1237_v4, %v581_v18  ;;  %v616_v11 = vmul.f32 %v1224_v8, %v592_v32  ;;  %v606_v40 = vmul.f32 %v1237_v4, %v582_v30 }
 0x11c   :  { %v554_v39 = vadd.f32 %v553_v34, %v552_v27  ;;  %v607_v12 = vmul.f32 %v1237_v4, %v583_v25  ;;  %v608_v44 = vmul.f32 %v1237_v4, %v584_v3  ;;  %v637_v41 = vadd.f32 %v1256_v35, %v613_v6  ;;  %v1286_v27 = vpop.permute.xlu0 %662 }
 0x11d   :  { %v562_v46 = vmul.f32 0.1, %v540_v7  ;;  %v638_v45 = vadd.f32 %v1256_v35, %v614_v36  ;;  %v639_v54 = vadd.f32 %v1256_v35, %v615_v38  ;;  %v640_v20 = vadd.f32 %v1256_v35, %v616_v11 }
 0x11e   :  { %v555_v52 = vrot.slane %v554_v39, 1  ;;  %v629_v56 = vadd.f32 %v1249_v28, %v605_v10  ;;  %v653_v59 = vmax.f32 %v637_v41, 0.0  ;;  %v630_v63 = vadd.f32 %v1249_v28, %v606_v40 }
 0x11f   :  { %v570_v57 = vadd.f32 1e-05, %v562_v46  ;;  %v654_v62 = vmax.f32 %v638_v45, 0.0  ;;  %v655_v47 = vmax.f32 %v639_v54, 0.0  ;;  %v656_v43 = vmax.f32 %v640_v20, 0.0 }
 0x120   :  { %v556_v42 = vadd.f32 %v555_v52, %v554_v39  ;;  %v631_v9 = vadd.f32 %v1249_v28, %v607_v12  ;;  %v677_v50 = vmul.f32 %v1267_v53, %v653_v59  ;;  %v632_v14 = vadd.f32 %v1249_v28, %v608_v44 }
 0x121   :  { %935 = vrsqrt.f32 %v570_v57  ;;  %v678_v48 = vmul.f32 %v1267_v53, %v654_v62  ;;  %v679_v51 = vmul.f32 %v1267_v53, %v655_v47  ;;  %v680_v49 = vmul.f32 %v1267_v53, %v656_v43 }
 0x122   :  { %v932_v5 = vpop.eup %931  ;;  %v564_v21 = vmul.f32 0.1, %v556_v42  ;;  %v645_v15 = vmax.f32 %v629_v56, 0.0  ;;  %v685_v19 = vsel %vm55_vm0, %v677_v50, 0.0  ;;  %v648_v32 = vmax.f32 %v632_v14, 0.0 }
 0x123   :  { %v934_v13 = vpop.eup %933  ;;  %v585_v17 = vmul.f32 %v932_v5, %v1193_v60  ;;  %v593_v18 = vmul.f32 %v932_v5, %v1196_v61  ;;  %v693_v22 = vsel %vm55_vm0, %v678_v48, 0.0  ;;  %v701_v26 = vsel %vm55_vm0, %v679_v51, 0.0 }
 0x124   :  { %v587_v23 = vmul.f32 %v934_v13, %v1199_v0  ;;  %v595_v24 = vmul.f32 %v934_v13, %v1202_v1  ;;  %v572_v25 = vadd.f32 1e-05, %v564_v21  ;;  %v709_v60 = vsel %vm55_vm0, %v680_v49, 0.0 }
 0x125   :  { %v617_v29 = vmul.f32 %v1224_v8, %v593_v18  ;;  %v609_v30 = vmul.f32 %v1237_v4, %v585_v17  ;;  %v646_v61 = vmax.f32 %v630_v63, 0.0  ;;  %v647_v0 = vmax.f32 %v631_v9, 0.0 }
 0x126   :  { %937 = vrsqrt.f32 %v572_v25  ;;  %v619_v31 = vmul.f32 %v1224_v8, %v595_v24  ;;  %v611_v2 = vmul.f32 %v1237_v4, %v587_v23  ;;  %v669_v34 = vmul.f32 %v1286_v27, %v645_v15 }
 0x127   :  { %v641_v1 = vadd.f32 %v1256_v35, %v617_v29  ;;  %v633_v3 = vadd.f32 %v1249_v28, %v609_v30  ;;  %v670_v36 = vmul.f32 %v1286_v27, %v646_v61  ;;  %v671_v38 = vmul.f32 %v1286_v27, %v647_v0 }
 0x128   :  { %v643_v6 = vadd.f32 %v1256_v35, %v619_v31  ;;  %v635_v7 = vadd.f32 %v1249_v28, %v611_v2  ;;  %v672_v11 = vmul.f32 %v1286_v27, %v648_v32  ;;  %v686_v40 = vadd.f32 %v685_v19, %v669_v34 }
 0x129   :  { %v657_v10 = vmax.f32 %v641_v1, 0.0  ;;  %v649_v39 = vmax.f32 %v633_v3, 0.0  ;;  %v694_v44 = vadd.f32 %v693_v22, %v670_v36  ;;  %v702_v41 = vadd.f32 %v701_v26, %v671_v38 }
 0x12a   :  { %v659_v12 = vmax.f32 %v643_v6, 0.0  ;;  %v651_v46 = vmax.f32 %v635_v7, 0.0  ;;  %v687_v20 = vrot.slane %v686_v40, 4  ;;  %v710_v56 = vadd.f32 %v709_v60, %v672_v11 }
 0x12b   :  { %v936_v45 = vpop.eup %935  ;;  %v681_v52 = vmul.f32 %v1267_v53, %v657_v10  ;;  %v673_v54 = vmul.f32 %v1286_v27, %v649_v39  ;;  %v695_v43 = vrot.slane %v694_v44, 4  ;;  %v703_v9 = vrot.slane %v702_v41, 4 }
 0x12c   :  { %v586_v57 = vmul.f32 %v936_v45, %v1215_v33  ;;  %v594_v59 = vmul.f32 %v936_v45, %v1218_v37  ;;  %v683_v62 = vmul.f32 %v1267_v53, %v659_v12  ;;  %v675_v63 = vmul.f32 %v1286_v27, %v651_v46 }
 0x12d   :  { %v717_v42 = vsel %vm55_vm0, %v681_v52, 0.0  ;;  %v688_v47 = vadd.f32 %v687_v20, %v686_v40  ;;  %v711_v5 = vrot.slane %v710_v56, 4  ;;  %v696_v33 = vadd.f32 %v695_v43, %v694_v44 }
 0x12e   :  { %v618_v50 = vmul.f32 %v1224_v8, %v594_v59  ;;  %v610_v48 = vmul.f32 %v1237_v4, %v586_v57  ;;  %v733_v14 = vsel %vm55_vm0, %v683_v62, 0.0  ;;  %v704_v51 = vadd.f32 %v703_v9, %v702_v41 }
 0x12f   :  { %v689_v21 = vrot.slane %v688_v47, 2  ;;  %v718_v37 = vadd.f32 %v717_v42, %v673_v54  ;;  %v712_v17 = vadd.f32 %v711_v5, %v710_v56  ;;  %v734_v18 = vadd.f32 %v733_v14, %v675_v63 }
 0x130   :  { %v938_v49 = vpop.eup %937  ;;  %v642_v15 = vadd.f32 %v1256_v35, %v618_v50  ;;  %v634_v13 = vadd.f32 %v1249_v28, %v610_v48  ;;  %v697_v24 = vrot.slane %v696_v33, 2  ;;  %v705_v29 = vrot.slane %v704_v51, 2 }
 0x131   :  { %v588_v19 = vmul.f32 %v938_v49, %v1228_v55  ;;  %v596_v22 = vmul.f32 %v938_v49, %v1231_v58  ;;  %v690_v23 = vadd.f32 %v689_v21, %v688_v47  ;;  %v713_v30 = vrot.slane %v712_v17, 2 }
 0x132   :  { %v658_v25 = vmax.f32 %v642_v15, 0.0  ;;  %v650_v26 = vmax.f32 %v634_v13, 0.0  ;;  %v698_v2 = vadd.f32 %v697_v24, %v696_v33  ;;  %v706_v3 = vadd.f32 %v705_v29, %v704_v51 }
 0x133   :  { %v620_v60 = vmul.f32 %v1224_v8, %v596_v22  ;;  %v612_v61 = vmul.f32 %v1237_v4, %v588_v19  ;;  %v691_v31 = vrot.slane %v690_v23, 1  ;;  %v714_v55 = vadd.f32 %v713_v30, %v712_v17 }
 0x134   :  { %v682_v0 = vmul.f32 %v1267_v53, %v658_v25  ;;  %v674_v1 = vmul.f32 %v1286_v27, %v650_v26  ;;  %v699_v6 = vrot.slane %v698_v2, 1  ;;  %v707_v36 = vrot.slane %v706_v3, 1 }
 0x135   :  { %v644_v58 = vadd.f32 %v1256_v35, %v620_v60  ;;  %v636_v32 = vadd.f32 %v1249_v28, %v612_v61  ;;  %v692_v34 = vadd.f32 %v691_v31, %v690_v23  ;;  %v715_v8 = vrot.slane %v714_v55, 1 }
 0x136   :  { %v725_v7 = vsel %vm55_vm0, %v682_v0, 0.0  ;;  %v719_v38 = vrot.slane %v718_v37, 4  ;;  %v700_v39 = vadd.f32 %v699_v6, %v698_v2  ;;  %v708_v40 = vadd.f32 %v707_v36, %v706_v3 }
 0x137   :  { %v660_v4 = vmax.f32 %v644_v58, 0.0  ;;  %v652_v10 = vmax.f32 %v636_v32, 0.0  ;;  %v726_v11 = vadd.f32 %v725_v7, %v674_v1  ;;  %v716_v12 = vadd.f32 %v715_v8, %v714_v55 }
 0x138   :  { %v720_v46 = vadd.f32 %v719_v38, %v718_v37  ;;  %v735_v44 = vrot.slane %v734_v18, 4  ;;  %v751_v45 = vadd.f32 %v1243_v16, %v692_v34  ;;  %v752_v20 = vadd.f32 %v1243_v16, %v700_v39 }
 0x139   :  { %v684_v41 = vmul.f32 %v1267_v53, %v660_v4  ;;  %v676_v35 = vmul.f32 %v1286_v27, %v652_v10  ;;  %v727_v28 = vrot.slane %v726_v11, 4  ;;  %v753_v56 = vadd.f32 %v1243_v16, %v708_v40 }
 0x13a   :  { %v721_v52 = vrot.slane %v720_v46, 2  ;;  %v736_v54 = vadd.f32 %v735_v44, %v734_v18  ;;  %v754_v62 = vadd.f32 %v1243_v16, %v716_v12  ;;  %v759_v63 = vsub.f32 0.0, %v751_v45 }
 0x13b   :  { %v741_v57 = vsel %vm55_vm0, %v684_v41, 0.0  ;;  %v728_v59 = vadd.f32 %v727_v28, %v726_v11  ;;  %v760_v43 = vsub.f32 0.0, %v752_v20  ;;  %v761_v9 = vsub.f32 0.0, %v753_v56 }
 0x13c   :  { %v722_v42 = vadd.f32 %v721_v52, %v720_v46  ;;  %v737_v47 = vrot.slane %v736_v54, 2  ;;  %v742_v53 = vadd.f32 %v741_v57, %v676_v35  ;;  %v762_v50 = vsub.f32 0.0, %v754_v62 }
 0x13d   :  { %v729_v27 = vrot.slane %v728_v59, 2  ;;  %v767_v48 = vmul.f32 1.442695, %v759_v63  ;;  %v769_v33 = vmul.f32 1.442695, %v760_v43  ;;  %v822_v11 = vlaneseq }
 0x13e   :  { %v723_v14 = vrot.slane %v722_v42, 1  ;;  %v738_v5 = vadd.f32 %v737_v47, %v736_v54  ;;  %v743_v21 = vrot.slane %v742_v53, 4  ;;  %v771_v37 = vmul.f32 1.442695, %v761_v9 }
 0x13f   :  { %v730_v51 = vadd.f32 %v729_v27, %v728_v59  ;;  %939 = vpow2.f32 %v767_v48  ;;  %v773_v49 = vmul.f32 1.442695, %v762_v50  ;;  %v977_v10 = vmov 1966171168  }
 0x140   :  { %v724_v15 = vadd.f32 %v723_v14, %v722_v42  ;;  %v739_v13 = vrot.slane %v738_v5, 1  ;;  %v744_v17 = vadd.f32 %v743_v21, %v742_v53  ;;  %941 = vpow2.f32 %v769_v33 }
 0x141   :  { %v731_v18 = vrot.slane %v730_v51, 1  ;;  %943 = vpow2.f32 %v771_v37  ;;  %v820_v39 = vunpack.c.l.s4 %v977_v10  ;;  %v823_v46 = vshrl.u32 %v822_v11, 7 }
 0x142   :  { %v740_v19 = vadd.f32 %v739_v13, %v738_v5  ;;  %v745_v22 = vrot.slane %v744_v17, 2  ;;  %v755_v23 = vadd.f32 %v1243_v16, %v724_v15  ;;  %945 = vpow2.f32 %v773_v49 }
 0x143   :  { %v732_v24 = vadd.f32 %v731_v18, %v730_v51 }
 0x144   :  { %v746_v25 = vadd.f32 %v745_v22, %v744_v17  ;;  %v757_v26 = vadd.f32 %v1243_v16, %v740_v19  ;;  %v763_v29 = vsub.f32 0.0, %v755_v23 }
 0x145   :  { %v756_v30 = vadd.f32 %v1243_v16, %v732_v24 }
 0x146   :  { %v747_v60 = vrot.slane %v746_v25, 1  ;;  %v765_v61 = vsub.f32 0.0, %v757_v26  ;;  %v775_v31 = vmul.f32 1.442695, %v763_v29 }
 0x147   :  { %v764_v2 = vsub.f32 0.0, %v756_v30 }
 0x148   :  { %v748_v0 = vadd.f32 %v747_v60, %v746_v25  ;;  %947 = vpow2.f32 %v775_v31  ;;  %v779_v1 = vmul.f32 1.442695, %v765_v61 }
 0x149   :  { %v940_v3 = vpop.eup %939  ;;  %v777_v55 = vmul.f32 1.442695, %v764_v2 }
 0x14a   :  { %v942_v58 = vpop.eup %941  ;;  %v758_v32 = vadd.f32 %v1243_v16, %v748_v0  ;;  %949 = vpow2.f32 %v779_v1  ;;  %v783_v34 = vadd.f32 1.0, %v940_v3  ;;  %v821_v16 = vunpack.c.0.s8 %v820_v39 }
 0x14b   :  { %v944_v6 = vpop.eup %943  ;;  %951 = vpow2.f32 %v777_v55  ;;  %v784_v7 = vadd.f32 1.0, %v942_v58 }
 0x14c   :  { %v946_v36 = vpop.eup %945  ;;  %v766_v8 = vsub.f32 0.0, %v758_v32  ;;  %v785_v38 = vadd.f32 1.0, %v944_v6  ;;  %953 = vrcp.f32 %v783_v34  ;;  %v824_v45 = vsub.s32 %v821_v16, %v823_v46 }
 0x14d   :  { %v786_v4 = vadd.f32 1.0, %v946_v36  ;;  %955 = vrcp.f32 %v784_v7 }
 0x14e   :  { %v781_v40 = vmul.f32 1.442695, %v766_v8  ;;  %957 = vrcp.f32 %v785_v38 }
 0x14f   :  { %959 = vrcp.f32 %v786_v4 }
 0x150   :  { %961 = vpow2.f32 %v781_v40 }
 0x152   :  { %v948_v12 = vpop.eup %947 }
 0x153   :  { %v787_v44 = vadd.f32 1.0, %v948_v12 }
 0x154   :  { %v950_v41 = vpop.eup %949 }
 0x155   :  { %v952_v35 = vpop.eup %951  ;;  %963 = vrcp.f32 %v787_v44  ;;  %v789_v20 = vadd.f32 1.0, %v950_v41 }
 0x156   :  { %v954_v28 = vpop.eup %953  ;;  %v788_v52 = vadd.f32 1.0, %v952_v35 }
 0x157   :  { %v956_v54 = vpop.eup %955 }
 0x158   :  { %v958_v56 = vpop.eup %957  ;;  %965 = vrcp.f32 %v788_v52  ;;  %v815_v57 = vcombine.low %v954_v28, %v956_v54 }
 0x159   :  { %v960_v59 = vpop.eup %959  ;;  %967 = vrcp.f32 %v789_v20 }
 0x15a   :  { %v962_v62 = vpop.eup %961  ;;  %v816_v63 = vcombine.low %v958_v56, %v960_v59  ;;  %v825_v42 = vrot.slane %v815_v57, %v824_v45 }
 0x15b   :  { %v790_v47 = vadd.f32 1.0, %v962_v62 }
 0x15c   :  { %v832_v53 = vrot.slane %v816_v63, %v824_v45 }
 0x15d   :  { %969 = vrcp.f32 %v790_v47 }
 0x15e   :  { %v847_v43 = vcombine.low %v825_v42, %v832_v53 }
 0x15f   :  { %v964_v27 = vpop.eup %963 }
 0x160   :  { %v855_v37 = vrot.slane %v847_v43, %v824_v45 }
 0x162   :  { %v966_v9 = vpop.eup %965 }
 0x163   :  { %v817_v50 = vcombine.low %v964_v27, %v966_v9  ;;  %v968_v48 = vpop.eup %967 }
 0x165   :  { %v839_v21 = vrot.slane %v817_v50, %v824_v45 }
 0x167   :  { %v970_v14 = vpop.eup %969 }
 0x168   :  { %v818_v5 = vcombine.low %v968_v48, %v970_v14 }
 0x16a   :  { %v846_v33 = vrot.slane %v818_v5, %v824_v45 }
 0x16c   :  { %v848_v51 = vcombine.low %v839_v21, %v846_v33 }
 0x16e   :  { %v862_v49 = vrot.slane %v848_v51, %v824_v45 }
 0x170   :  { %v863_v15 = vcombine.low %v855_v37, %v862_v49 }
 0x172   :  { %865 = vst [vmem:[%s1340_s4] sm:$0xff] %v863_v15 }

</bundles_post_ra>
